<compile_context>
chip_gen: v7x
topology: tpu7x:2x2x1
jax: 0.10.0
libtpu: 0.0.40
codegen_flags: <defaults>
</compile_context>

<pallas_src>
import functools

import jax
import jax.numpy as jnp
from jax import lax
from jax.experimental import pallas as pl
from jax.experimental.pallas import tpu as pltpu

EPS = 1e-5


@functools.lru_cache(maxsize=None)
def _roll_is_forward():
    """True iff pltpu.roll matches jnp.roll (result[i] = x[i - shift])."""
    def k(x_ref, o_ref):
        o_ref[...] = pltpu.roll(x_ref[...], 1, 1)

    x = jnp.arange(8 * 128, dtype=jnp.float32).reshape(8, 128)
    out = pl.pallas_call(
        k, out_shape=jax.ShapeDtypeStruct((8, 128), jnp.float32))(x)
    return bool(out[0, 1] == x[0, 0])


def make_kernel(H, W, C, d2, d4, roll_fwd):
    """Builds the Pallas kernel body for static shapes / dilations."""
    HW = H * W

    def lane_shift(v, s):
        # result[:, p] = v[:, (p + s) mod HW]; wrapped lanes are masked later.
        amt = ((-s) if roll_fwd else s) % HW
        return pltpu.roll(v, amt, 1)

    def kernel(x_ref, w1_ref, w2_ref, w4_ref, nb_ref, out_ref):
        x = x_ref[0]                                    # (C, HW) f32
        nb = nb_ref[...]                                # (C, 6)  f32

        # Flat spatial coordinates, computed once, reused by both convs.
        p = lax.broadcasted_iota(jnp.int32, (C, HW), 1)
        yy = p // W
        xx = p - yy * W

        def inorm_relu(v, col):
            # InstanceNorm2d (biased variance, eps=1e-5, affine) + ReLU.
            # Single-pass stats fused into one per-channel scale/shift.
            gamma = nb[:, col:col + 1]                  # (C, 1)
            beta = nb[:, col + 1:col + 2]               # (C, 1)
            s1 = jnp.sum(v, axis=1, keepdims=True)
            s2 = jnp.sum(v * v, axis=1, keepdims=True)
            mean = s1 * (1.0 / HW)
            var = s2 * (1.0 / HW) - mean * mean
            scale = gamma * lax.rsqrt(var + EPS)
            shift = beta - mean * scale
            return jnp.maximum(v * scale + shift, 0.0)

        def dilated_conv3x3(v, w_ref, d):
            # im2col via lane rolls + static border masks, one bf16 matmul.
            taps = []
            for ky in range(3):
                dy = (ky - 1) * d
                for kx in range(3):
                    dx = (kx - 1) * d
                    s = dy * W + dx
                    t = v if s == 0 else lane_shift(v, s)
                    conds = []
                    if dy > 0:
                        conds.append(yy < H - dy)
                    elif dy < 0:
                        conds.append(yy >= -dy)
                    if dx > 0:
                        conds.append(xx < W - dx)
                    elif dx < 0:
                        conds.append(xx >= -dx)
                    if conds:
                        valid = conds[0]
                        for c in conds[1:]:
                            valid = valid & c
                        t = jnp.where(valid, t, 0.0)
                    taps.append(t)
            stack = jnp.concatenate(taps, axis=0)       # (9C, HW) f32, aligned
            return jnp.dot(w_ref[...], stack.astype(jnp.bfloat16),
                           preferred_element_type=jnp.float32)  # (C, HW) f32

        # ---- branch 1: IN1 -> ReLU -> conv1 (1x1) ----
        y1 = inorm_relu(x, 0)
        out1 = jnp.dot(w1_ref[...], y1.astype(jnp.bfloat16),
                       preferred_element_type=jnp.float32)

        # ---- branch 2: IN2 -> ReLU -> conv2 (3x3, dil d2)
        #               -> IN4 -> ReLU -> conv4 (3x3, dil d4) ----
        y2 = inorm_relu(x, 2)
        t = dilated_conv3x3(y2, w2_ref, d2)
        y4 = inorm_relu(t, 4)
        out2 = dilated_conv3x3(y4, w4_ref, d4)

        out_ref[0] = x + out1 + out2

    return kernel


@functools.partial(jax.jit, static_argnums=(5, 6, 7))
def _four_dilate_block_impl(x_nchw, w1_mat, w2_mat, w4_mat, nb,
                            d2, d4, roll_fwd):
    N, C, H, W = x_nchw.shape
    HW = H * W
    x = x_nchw.reshape(N, C, HW)                        # free reshape of NCHW

    # bf16 matmul operands, f32 accumulation.
    w1b = w1_mat.astype(jnp.bfloat16)                   # (Cout, Cin)
    w2b = w2_mat.astype(jnp.bfloat16)                   # (Cout, 9*Cin)
    w4b = w4_mat.astype(jnp.bfloat16)                   # (Cout, 9*Cout)

    kernel = make_kernel(H, W, C, d2, d4, roll_fwd)
    out = pl.pallas_call(
        kernel,
        out_shape=jax.ShapeDtypeStruct((N, C, HW), jnp.float32),
        grid_spec=pltpu.PrefetchScalarGridSpec(
            num_scalar_prefetch=0,
            grid=(N,),
            in_specs=[
                pl.BlockSpec((1, C, HW), lambda n: (n, 0, 0)),
                pl.BlockSpec((C, C), lambda n: (0, 0)),
                pl.BlockSpec((C, 9 * C), lambda n: (0, 0)),
                pl.BlockSpec((C, 9 * C), lambda n: (0, 0)),
                pl.BlockSpec((C, 6), lambda n: (0, 0)),
            ],
            out_specs=pl.BlockSpec((1, C, HW), lambda n: (n, 0, 0)),
        ),
        compiler_params=pltpu.CompilerParams(
            dimension_semantics=("parallel",),
            vmem_limit_bytes=48 * 1024 * 1024),
    )(x, w1b, w2b, w4b, nb)

    # TODO(synk): for very large H*W on v7x (64 MiB VMEM/TC) add an H-tile
    # grid axis with a (d2+d4) halo plus a separate InstanceNorm-stats pass.
    return out.reshape(N, C, H, W)


def four_dilate_block(x_nchw, w1_mat, w2_mat, w4_mat, nb, d2, d4):
    return _four_dilate_block_impl(x_nchw, w1_mat, w2_mat, w4_mat, nb,
                                   d2, d4, _roll_is_forward())


def reference(x, w1, w2, w4, params, d2, d4):
    """Pure-JAX f32 reference matching the PyTorch forward semantics (NCHW)."""
    g1, b1, g2, b2, g4, b4 = params
    dn = ("NCHW", "OIHW", "NCHW")

    def inorm(v, g, b):
        m = jnp.mean(v, axis=(2, 3), keepdims=True)
        var = jnp.mean(jnp.square(v - m), axis=(2, 3), keepdims=True)
        y = (v - m) * lax.rsqrt(var + EPS)
        return y * g[None, :, None, None] + b[None, :, None, None]

    relu = lambda v: jnp.maximum(v, 0.0)

    y1 = relu(inorm(x, g1, b1))
    out1 = lax.conv_general_dilated(y1, w1, (1, 1), [(0, 0), (0, 0)],
                                    dimension_numbers=dn)
    y2 = relu(inorm(x, g2, b2))
    t = lax.conv_general_dilated(y2, w2, (1, 1), [(d2, d2), (d2, d2)],
                                 rhs_dilation=(d2, d2), dimension_numbers=dn)
    y4 = relu(inorm(t, g4, b4))
    out2 = lax.conv_general_dilated(y4, w4, (1, 1), [(d4, d4), (d4, d4)],
                                    rhs_dilation=(d4, d4), dimension_numbers=dn)
    return x + out1 + out2


if __name__ == "__main__":
    # Small deterministic setup (in_channels == out_channels, as required by
    # the residual add / norm4 in the PyTorch module).  H*W = 256 keeps the
    # lane dimension a multiple of 128; N=2 feeds both v7x TensorCores.
    N, C, H, W = 2, 8, 16, 16
    d2, d4 = 1, 2

    key = jax.random.PRNGKey(0)
    ks = jax.random.split(key, 10)
    x = jax.random.normal(ks[0], (N, C, H, W), jnp.float32)

    # PyTorch-shaped conv weights (Cout, Cin, kh, kw).
    # TODO(synk): module's orthogonal SVD init is replaced by scaled normals.
    w1 = 0.30 * jax.random.normal(ks[1], (C, C, 1, 1), jnp.float32)
    w2 = 0.10 * jax.random.normal(ks[2], (C, C, 3, 3), jnp.float32)
    w4 = 0.10 * jax.random.normal(ks[3], (C, C, 3, 3), jnp.float32)

    # InstanceNorm affine params (gamma, beta) for norm1, norm2, norm4.
    g1 = 1.0 + 0.1 * jax.random.normal(ks[4], (C,), jnp.float32)
    b1 = 0.1 * jax.random.normal(ks[5], (C,), jnp.float32)
    g2 = 1.0 + 0.1 * jax.random.normal(ks[6], (C,), jnp.float32)
    b2 = 0.1 * jax.random.normal(ks[7], (C,), jnp.float32)
    g4 = 1.0 + 0.1 * jax.random.normal(ks[8], (C,), jnp.float32)
    b4 = 0.1 * jax.random.normal(ks[9], (C,), jnp.float32)

    # Kernel-friendly weight layouts (channels-first matmul forms).
    w1_mat = w1[:, :, 0, 0]                                      # (Cout, Cin)
    w2_mat = jnp.transpose(w2, (0, 2, 3, 1)).reshape(C, 9 * C)   # tap-major
    w4_mat = jnp.transpose(w4, (0, 2, 3, 1)).reshape(C, 9 * C)
    nb = jnp.stack([g1, b1, g2, b2, g4, b4], axis=1)             # (C, 6)

    out = four_dilate_block(x, w1_mat, w2_mat, w4_mat, nb, d2, d4)
    out = jax.block_until_ready(out)

    ref = reference(x, w1, w2, w4, (g1, b1, g2, b2, g4, b4), d2, d4)
    ref = jax.block_until_ready(ref)

    assert out.shape == (N, C, H, W)
    max_err = float(jnp.max(jnp.abs(out - ref)))
    # bf16 matmul operands (f32 accumulation) vs f32 reference: tolerance
    # relaxed from 1e-3 accordingly.
    assert max_err < 5e-2, f"mismatch vs reference: {max_err}"
    print("KERNEL_OK")
</pallas_src>

<mosaic_0001>
module attributes {stable_mosaic.version = 11 : i64} {
  func.func @k(%arg0: memref<8x128xf32, #tpu.memory_space<vmem>>, %arg1: memref<8x128xf32, #tpu.memory_space<vmem>>) attributes {dimension_semantics = [], scalar_prefetch = 0 : i64, scratch_operands = 0 : i64, tpu.core_type = #tpu.core_type<tc>} {
    %c0 = arith.constant 0 : index
    %c0_0 = arith.constant 0 : index
    %0 = vector.load %arg0[%c0, %c0_0] : memref<8x128xf32, #tpu.memory_space<vmem>>, vector<8x128xf32>
    %c1_i32 = arith.constant 1 : i32
    %1 = tpu.dynamic_rotate %0 by %c1_i32 dim 1 : vector<8x128xf32>, i32 -> vector<8x128xf32>
    %c0_1 = arith.constant 0 : index
    %c0_2 = arith.constant 0 : index
    %2 = vector.load %arg1[%c0_1, %c0_2] : memref<8x128xf32, #tpu.memory_space<vmem>>, vector<8x128xf32>
    tpu.vector_store %arg1[%c0_1, %c0_2], %1 {strides = array<i32>} : memref<8x128xf32, #tpu.memory_space<vmem>>, vector<8x128xf32>,
    return
  }
}

</mosaic_0001>

<bundles_post_ra>
// kernel: tpu_custom_call.1
= control target key start
LH: loop header
LB: loop body
LE: loop exit
PB: predicated region body
PF: predicated region fallthrough
CT: control target
= control target key end

     0   :  { %6 = vsyncpa [#allocation3], 0  ;;  %s128_s0 = inlined_call_operand.hbm [shape: f32[8,128], index: 0, kind: input, shape index: {}]   ;;  %s129_s1 = inlined_call_operand.hbm [shape: f32[8,128], index: 1, kind: output, shape index: {}]  }
   0x1   :  { %7 = vsyncpa [#allocation4], 0  ;;  %s91_s6 = smov [#allocation2]   ;;  %s43_s10 = scalar_lea.hbm %s128_s0, 128 }
   0x2   :  { %s14_s7 = sshll.u32 %s91_s6, 4  ;;  %p44_p0 = scmp.ne.s32.totalorder %s128_s0, %s43_s10  ;;  %s15_s7 = int_to_ptr.vmem [resolvable:$true] %s14_s7 }
   0x3   :  { %p47_p1 = scmp.lt.u32.totalorder %s43_s10, %s128_s0 }
   0x5   :  { %p49_p2 = pnand %p47_p1, %p44_p0 }
   0x7   :  { %52 = shalt.err (!%p49_p2)
}
   0x8   :  { %s53_s15 = scalar_lea.vmem %s15_s7, 128  ;;  %p58_p4 = scmp.lt.s32.totalorder %s15_s7, %s15_s7 }
   0x9   :  { %p54_p3 = scmp.ne.s32.totalorder %s15_s7, %s53_s15  ;;  %p59_p5 = scmp.lt.s32.totalorder %s53_s15, %s53_s15 }
   0xb   :  { %p60_p6 = por %p59_p5, %p58_p4 }
   0xd   :  { %p61_p7 = pnand %p60_p6, %p54_p3 }
   0xf   :  { %64 = shalt.err (!%p61_p7)
}
  0x10   :  { %17 = dma.hbm_to_vmem [thread:$0]  %s128_s0, 128, %s15_s7, [#allocation3]  }
  0x11   :  { %87 = dma.done.wait [#allocation3], 128  }
  0x12   :  { %88 = vsyncadd [#allocation3], 4294967168  ;;  %v21_v0 = vld [vmem:[#allocation2] sm:$0xff]  ;;  %s92_s18 = smov 1   ;;  %s93_s19 = smov [#allocation5]  }
  0x13   :  { %22 = vrot.lane.b32.xlu0 %v21_v0, %s92_s18  ;;  %s31_s20 = sshll.u32 %s93_s19, 4  ;;  %s32_s20 = int_to_ptr.vmem [resolvable:$true] %s31_s20 }
  0x14   :  { %s65_s21 = scalar_lea.vmem %s32_s20, 128  ;;  %p70_p9 = scmp.lt.s32.totalorder %s32_s20, %s32_s20 }
  0x15   :  { %p66_p8 = scmp.ne.s32.totalorder %s32_s20, %s65_s21  ;;  %p71_p10 = scmp.lt.s32.totalorder %s65_s21, %s65_s21 }
  0x17   :  { %p72_p11 = por %p71_p10, %p70_p9 }
  0x19   :  { %p73_p12 = pnand %p72_p11, %p66_p8 }
  0x85   :  { %v23_v1 = vpop.permute.xlu0 %22 }
  0x86   :  { %24 = vst [vmem:[#allocation5] sm:$0xff] %v23_v1 }
  0x87   :  { %76 = shalt.err (!%p73_p12)
}
  0x88   :  { %s77_s0 = scalar_lea.hbm %s129_s1, 128 }
  0x89   :  { %p78_p13 = scmp.ne.s32.totalorder %s129_s1, %s77_s0  ;;  %p81_p0 = scmp.lt.u32.totalorder %s77_s0, %s129_s1 }
  0x8b   :  { %p83_p1 = pnand %p81_p0, %p78_p13 }
  0x8d   :  { %86 = shalt.err (!%p83_p1)
}
  0x8e   :  { %34 = dma.vmem_to_hbm [thread:$0]  %s32_s20, 128, %s129_s1, [#allocation4]  }
  0x8f   :  { %89 = dma.done.wait [#allocation4], 128  }
  0x90   :  { %90 = vsyncadd [#allocation4], 4294967168 }
  0x91   :  { %38 = vsyncpa [#allocation3], 1 }
  0x92   :  { %39 = vsyncpa [#allocation4], 1 }

</bundles_post_ra>
